<compile_context>
chip_gen: v5e
topology: v5e:2x2
jax: 0.10.0
libtpu: 0.0.40
codegen_flags: <defaults>
</compile_context>

<pallas_src>
import jax
import jax.numpy as jnp
from jax.experimental import pallas as pl
from jax.experimental.pallas import tpu as pltpu


# ---------------------------------------------------------------------------
# Kernel: nibble/crumb unpack + per-run alpha scale
# ---------------------------------------------------------------------------
def _plane_info(bits):
    if bits in (3, 4):          # 3-bit uses the 4-bit packaging (module docstring)
        return 2, 4, 8.0        # (planes, field bits, zero point)
    if bits == 2:
        return 4, 2, 2.0
    raise ValueError("only the 2/3/4-bit packed paths are kernelized here")


def _make_dequant_kernel(bits):
    n_planes, field_bits, zero_pt = _plane_info(bits)
    mask = (1 << field_bits) - 1

    def kernel(packed_ref, alpha_ref, w_ref):
        # packed_ref : (T, L)            uint8   (widened in-register, not on host)
        # alpha_ref  : (n_planes, T, 1)  float32 (one scalar per alpha-run)
        # w_ref      : (n_planes, T, L)  out dtype
        p = packed_ref[...].astype(jnp.int32)
        for plane in range(n_planes):
            # Every extracted field is masked -> robust to any sign-extension
            # of the narrow load.
            q = jnp.bitwise_and(jnp.right_shift(p, plane * field_bits), mask)
            v = q.astype(jnp.float32) - zero_pt
            # alpha_ref[plane] is (T, 1): expansion over L is a lane broadcast.
            # Separate per-plane stores (no concatenate) keep vreg pressure low
            # and land each plane directly in its final row range.
            w_ref[plane] = (v * alpha_ref[plane]).astype(w_ref.dtype)

    return kernel


# ---------------------------------------------------------------------------
# Tile selection: VMEM-budgeted, 32-aligned, >= 2 grid steps when possible
# ---------------------------------------------------------------------------
def _choose_tile(runs_per_plane, run_len, n_planes, out_bytes, tile_runs):
    if tile_runs is None:
        try:
            vmem_cap = int(pltpu.get_tpu_info().vmem_capacity_bytes)
        except Exception:
            vmem_cap = 64 << 20            # conservative: v7x per-TC VMEM
        budget = min(vmem_cap // 4, 16 << 20)
        # Per run of length L: 2 input bufs (1 B) + 2 output bufs (n_planes*out_bytes)
        # + 2 alpha bufs (n_planes * 4 B).  The 2-bit path (n_planes=4) is covered.
        per_run = 2 * run_len * (1 + n_planes * out_bytes) + 8 * n_planes
        tile_runs = max(32, budget // per_run)

    tile = (min(int(tile_runs), runs_per_plane) // 32) * 32
    if tile == 0:
        return runs_per_plane              # tiny weight: one full-extent block
    if tile >= runs_per_plane:
        if runs_per_plane >= 64:
            # Force >= 2 grid steps so "parallel" shards over v7x's 2 TCs and
            # DMA/compute overlap even for small/medium weights.
            tile = max(32, ((runs_per_plane // 2) // 32) * 32)
        else:
            tile = runs_per_plane
    return tile


# ---------------------------------------------------------------------------
# Wrapper: "load_state_dict_quant" weight reconstruction for one DSConv2d weight
# ---------------------------------------------------------------------------
def load_quantized_weight(packed_u8, alpha, weight_shape, bits, block_size,
                          out_dtype=jnp.bfloat16, tile_runs=None):
    """Reconstructs  weight = intw * alpha  from packed uint8 weights.

    packed_u8    : flat uint8 exactly as produced by state_dict_quant
    alpha        : (Cout, Cin // block_size, 1, 1) per-block scale
    weight_shape : (Cout, Cin, KH, KW)   -- PyTorch OIHW
    out_dtype    : bf16 by default (consumer MXU takes bf16 weights); pass
                   jnp.float32 for exact torch load_state_dict_quant numerics.
    """
    cout, cin, kh, kw = weight_shape
    n = cout * cin * kh * kw
    n_planes, _, _ = _plane_info(bits)

    # TODO(synk): the module's alpha[:, :cin] slice for a ragged last channel
    # block (cin % block_size != 0) is not handled in this fast path.
    if cin % block_size != 0:
        raise NotImplementedError("cin must be a multiple of block_size")
    run_len = block_size * kh * kw                 # alpha-constant run length L
    num_runs = n // run_len                        # = cout * (cin // block_size)
    if num_runs % n_planes != 0:
        raise NotImplementedError(
            "cout * cin / block_size must split evenly across packed planes")
    runs_per_plane = num_runs // n_planes
    assert packed_u8.size == runs_per_plane * run_len, "packed size mismatch"
    assert alpha.size == num_runs, "alpha size mismatch"

    # Packed bytes stay uint8 (1 B/elem of HBM traffic).  Each packed row of L
    # bytes produces one row of every plane.
    packed_2d = packed_u8.reshape(runs_per_plane, run_len)
    # One f32 scalar per run per plane (~run_len x smaller than a full alpha).
    alpha_runs = alpha.astype(jnp.float32).reshape(n_planes, runs_per_plane, 1)

    out_bytes = jnp.dtype(out_dtype).itemsize
    tile = _choose_tile(runs_per_plane, run_len, n_planes, out_bytes, tile_runs)
    grid = (pl.cdiv(runs_per_plane, tile),)        # ragged last block masked by Pallas

    # VMEM budget hint: double-buffered in/alpha/out blocks + headroom.
    vmem_est = 2 * (tile * run_len
                    + n_planes * tile * 4
                    + n_planes * tile * run_len * out_bytes)
    vmem_limit = int(min(48 << 20, max(16 << 20, vmem_est + (2 << 20))))

    packed_spec = pl.BlockSpec((tile, run_len), lambda i: (i, 0))
    alpha_spec = pl.BlockSpec((n_planes, tile, 1), lambda i: (0, i, 0))
    out_spec = pl.BlockSpec((n_planes, tile, run_len), lambda i: (0, i, 0))

    out = pl.pallas_call(
        _make_dequant_kernel(bits),
        out_shape=jax.ShapeDtypeStruct((n_planes, runs_per_plane, run_len), out_dtype),
        grid=grid,
        in_specs=[packed_spec, alpha_spec],
        out_specs=out_spec,
        compiler_params=pltpu.CompilerParams(
            dimension_semantics=("parallel",),     # v7x: shard run tiles over 2 TCs
            vmem_limit_bytes=vmem_limit),
    )(packed_2d, alpha_runs)

    # (plane, run, pos) flattens to exactly the torch.cat((val1, val2, ...)) order.
    return out.reshape(weight_shape)


# ---------------------------------------------------------------------------
# Plain-JAX glue mirroring QuantizedModule.__compress_to_{4,2}_bits__
# (storage-side packaging, equivalent to state_dict_quant)
# ---------------------------------------------------------------------------
def compress_to_4_bits(intw):
    val = intw.reshape(-1).astype(jnp.int32)
    n = val.shape[0]
    v1 = val[: n // 2] + 8
    v2 = val[n // 2:] + 8
    return (v1 + 16 * v2).astype(jnp.uint8)


def compress_to_2_bits(intw):
    val = intw.reshape(-1).astype(jnp.int32)
    n = val.shape[0]
    q = n // 4
    v1 = val[0 * q:1 * q] + 2
    v2 = val[1 * q:2 * q] + 2
    v3 = val[2 * q:3 * q] + 2
    v4 = val[3 * q:4 * q] + 2
    return (v1 + 4 * v2 + 16 * v3 + 64 * v4).astype(jnp.uint8)


# ---------------------------------------------------------------------------
# Pure-JAX reference mimicking the PyTorch decompress + weight reconstruction
# ---------------------------------------------------------------------------
def reference_weight(intw, alpha, block_size):
    cout, cin = intw.shape[:2]
    alpha_rep = jnp.repeat(alpha.astype(jnp.float32), block_size, axis=1)[:, :cin]
    return intw.astype(jnp.float32) * alpha_rep


if __name__ == "__main__":
    key = jax.random.PRNGKey(0)
    k1, k2, k3, k4, k5, k6, k7 = jax.random.split(key, 7)

    KH = KW = 3
    BLOCK = 32

    # --- Test 1: 4-bit round trip, small DSConv2d weight, exact f32 output ---
    COUT, CIN = 8, 64
    wshape = (COUT, CIN, KH, KW)
    intw4 = jax.random.randint(k1, wshape, -8, 8, dtype=jnp.int32)
    alpha = jax.random.uniform(k2, (COUT, CIN // BLOCK, 1, 1),
                               minval=0.5, maxval=1.5, dtype=jnp.float32)
    packed4 = compress_to_4_bits(intw4)
    w4 = jax.block_until_ready(
        load_quantized_weight(packed4, alpha, wshape, bits=4, block_size=BLOCK,
                              out_dtype=jnp.float32))
    ref4 = reference_weight(intw4, alpha, BLOCK)
    assert w4.shape == wshape and w4.dtype == jnp.float32
    assert jnp.allclose(w4, ref4, atol=1e-6), "4-bit dequant mismatch"

    # --- Test 2: 2-bit round trip, exact f32 output ---------------------------
    intw2 = jax.random.randint(k3, wshape, -2, 2, dtype=jnp.int32)
    packed2 = compress_to_2_bits(intw2)
    w2 = jax.block_until_ready(
        load_quantized_weight(packed2, alpha, wshape, bits=2, block_size=BLOCK,
                              out_dtype=jnp.float32))
    ref2 = reference_weight(intw2, alpha, BLOCK)
    assert jnp.allclose(w2, ref2, atol=1e-6), "2-bit dequant mismatch"

    # --- Test 3: ragged multi-tile grid path (no padding), bf16 default -------
    COUT3, CIN3 = 40, 64
    wshape3 = (COUT3, CIN3, KH, KW)
    intw3 = jax.random.randint(k4, wshape3, -8, 8, dtype=jnp.int32)
    alpha3 = jax.random.uniform(k5, (COUT3, CIN3 // BLOCK, 1, 1),
                                minval=0.5, maxval=1.5, dtype=jnp.float32)
    packed3 = compress_to_4_bits(intw3)
    w3 = jax.block_until_ready(
        load_quantized_weight(packed3, alpha3, wshape3, bits=4, block_size=BLOCK,
                              tile_runs=32))
    ref3 = reference_weight(intw3, alpha3, BLOCK)
    assert w3.shape == wshape3 and w3.dtype == jnp.bfloat16
    assert jnp.allclose(w3.astype(jnp.float32), ref3, atol=6e-2), "bf16 dequant mismatch"

    # --- Test 4: auto tile (VMEM-budgeted) + forced >=2 grid steps, bf16 ------
    COUT4, CIN4 = 128, 64
    wshape4 = (COUT4, CIN4, KH, KW)
    intw5 = jax.random.randint(k6, wshape4, -8, 8, dtype=jnp.int32)
    alpha5 = jax.random.uniform(k7, (COUT4, CIN4 // BLOCK, 1, 1),
                                minval=0.5, maxval=1.5, dtype=jnp.float32)
    packed5 = compress_to_4_bits(intw5)
    w5 = jax.block_until_ready(
        load_quantized_weight(packed5, alpha5, wshape4, bits=4, block_size=BLOCK))
    ref5 = reference_weight(intw5, alpha5, BLOCK)
    assert w5.shape == wshape4 and w5.dtype == jnp.bfloat16
    assert jnp.allclose(w5.astype(jnp.float32), ref5, atol=6e-2), "auto-tile mismatch"

    print("KERNEL_OK")
</pallas_src>

<mosaic_0001>
module attributes {stable_mosaic.version = 11 : i64} {
  func.func @kernel(%arg0: i32, %arg1: memref<8x288xi8, #tpu.memory_space<vmem>>, %arg2: memref<2x8x1xf32, #tpu.memory_space<vmem>>, %arg3: memref<2x8x288xf32, #tpu.memory_space<vmem>>) attributes {dimension_semantics = [#tpu.dimension_semantics<parallel>], iteration_bounds = array<i64: 1>, scalar_prefetch = 0 : i64, scratch_operands = 0 : i64, tpu.core_type = #tpu.core_type<tc>, window_params = [{transform_indices = @transform_0, window_bounds = array<i64: 8, 288>}, {transform_indices = @transform_1, window_bounds = array<i64: 2, 8, 1>}, {transform_indices = @transform_2, window_bounds = array<i64: 2, 8, 288>}]} {
    %c0 = arith.constant 0 : index
    %c0_0 = arith.constant 0 : index
    %0 = vector.load %arg1[%c0, %c0_0] : memref<8x288xi8, #tpu.memory_space<vmem>>, vector<8x288xi8>
    %1 = arith.extui %0 : vector<8x288xi8> to vector<8x288xi32>
    %c0_i32 = arith.constant 0 : i32
    %2 = vector.broadcast %c0_i32 : i32 to vector<8x288xi32>
    %3 = arith.shrsi %1, %2 : vector<8x288xi32>
    %c15_i32 = arith.constant 15 : i32
    %4 = vector.broadcast %c15_i32 : i32 to vector<8x288xi32>
    %5 = arith.andi %3, %4 : vector<8x288xi32>
    %6 = arith.sitofp %5 : vector<8x288xi32> to vector<8x288xf32>
    %cst = arith.constant 8.000000e+00 : f32
    %7 = vector.broadcast %cst : f32 to vector<8x288xf32>
    %8 = arith.subf %6, %7 : vector<8x288xf32>
    %c0_1 = arith.constant 0 : index
    %c0_2 = arith.constant 0 : index
    %c0_3 = arith.constant 0 : index
    %9 = vector.load %arg2[%c0_1, %c0_2, %c0_3] : memref<2x8x1xf32, #tpu.memory_space<vmem>>, vector<1x8x1xf32>
    %10 = vector.shape_cast %9 : vector<1x8x1xf32> to vector<8x1xf32>
    %11 = vector.broadcast %10 : vector<8x1xf32> to vector<8x288xf32>
    %12 = arith.mulf %8, %11 : vector<8x288xf32>
    %c0_4 = arith.constant 0 : index
    %c0_5 = arith.constant 0 : index
    %c0_6 = arith.constant 0 : index
    %13 = vector.load %arg3[%c0_4, %c0_5, %c0_6] : memref<2x8x288xf32, #tpu.memory_space<vmem>>, vector<1x8x288xf32>
    %14 = vector.shape_cast %13 : vector<1x8x288xf32> to vector<8x288xf32>
    %15 = vector.shape_cast %12 : vector<8x288xf32> to vector<1x8x288xf32>
    tpu.vector_store %arg3[%c0_4, %c0_5, %c0_6], %15 {strides = array<i32>} : memref<2x8x288xf32, #tpu.memory_space<vmem>>, vector<1x8x288xf32>,
    %c4_i32 = arith.constant 4 : i32
    %16 = vector.broadcast %c4_i32 : i32 to vector<8x288xi32>
    %17 = arith.shrsi %1, %16 : vector<8x288xi32>
    %c15_i32_7 = arith.constant 15 : i32
    %18 = vector.broadcast %c15_i32_7 : i32 to vector<8x288xi32>
    %19 = arith.andi %17, %18 : vector<8x288xi32>
    %20 = arith.sitofp %19 : vector<8x288xi32> to vector<8x288xf32>
    %cst_8 = arith.constant 8.000000e+00 : f32
    %21 = vector.broadcast %cst_8 : f32 to vector<8x288xf32>
    %22 = arith.subf %20, %21 : vector<8x288xf32>
    %c1 = arith.constant 1 : index
    %c0_9 = arith.constant 0 : index
    %c0_10 = arith.constant 0 : index
    %23 = vector.load %arg2[%c1, %c0_9, %c0_10] : memref<2x8x1xf32, #tpu.memory_space<vmem>>, vector<1x8x1xf32>
    %24 = vector.shape_cast %23 : vector<1x8x1xf32> to vector<8x1xf32>
    %25 = vector.broadcast %24 : vector<8x1xf32> to vector<8x288xf32>
    %26 = arith.mulf %22, %25 : vector<8x288xf32>
    %c1_11 = arith.constant 1 : index
    %c0_12 = arith.constant 0 : index
    %c0_13 = arith.constant 0 : index
    %27 = vector.load %arg3[%c1_11, %c0_12, %c0_13] : memref<2x8x288xf32, #tpu.memory_space<vmem>>, vector<1x8x288xf32>
    %28 = vector.shape_cast %27 : vector<1x8x288xf32> to vector<8x288xf32>
    %29 = vector.shape_cast %26 : vector<8x288xf32> to vector<1x8x288xf32>
    tpu.vector_store %arg3[%c1_11, %c0_12, %c0_13], %29 {strides = array<i32>} : memref<2x8x288xf32, #tpu.memory_space<vmem>>, vector<1x8x288xf32>,
    return
  }
  func.func @transform_0(%arg0: i32) -> (i32, i32) {
    %c0_i32 = arith.constant 0 : i32
    %c0_i32_0 = arith.constant 0 : i32
    return %arg0, %c0_i32 : i32, i32
  }
  func.func @transform_1(%arg0: i32) -> (i32, i32, i32) {
    %c0_i32 = arith.constant 0 : i32
    %c0_i32_0 = arith.constant 0 : i32
    %c0_i32_1 = arith.constant 0 : i32
    return %c0_i32, %arg0, %c0_i32_0 : i32, i32, i32
  }
  func.func @transform_2(%arg0: i32) -> (i32, i32, i32) {
    %c0_i32 = arith.constant 0 : i32
    %c0_i32_0 = arith.constant 0 : i32
    %c0_i32_1 = arith.constant 0 : i32
    return %c0_i32, %arg0, %c0_i32_0 : i32, i32, i32
  }
}

</mosaic_0001>

<bundles_post_ra>
// kernel: tpu_custom_call.1
= control target key start
LH: loop header
LB: loop body
LE: loop exit
PB: predicated region body
PF: predicated region fallthrough
CT: control target
= control target key end

     0   :  { %s156_s0 = inlined_call_operand.vmem [shape: u8[8,288], index: 0, kind: input, shape index: {}]   ;;  %s157_s1 = inlined_call_operand.vmem [shape: f32[2,8,1], index: 1, kind: input, shape index: {}]   ;;  %s158_s2 = inlined_call_operand.hbm [shape: f32[2,8,288], index: 2, kind: output, shape index: {}]  }
   0x1   :  { %v28_v0 = vld [vmem:[%s157_s1] sm:$0xff] }
   0x2   :  { %7 = vsyncpa [#allocation3], 0  ;;  %v123_v1 = vmov 0   ;;  %v91_v2 = vld [vmem:[%s157_s1 + $0x8] sm:$0xff]  ;;  %v12_v3 = vld [vmem:[%s156_s0] sm:$0x3f] }
   0x3   :  { %96 = vset.pattern.permute.xlu0 %v123_v1  ;;  %v13_v4 = vunpack.c.0.s8 %v12_v3  ;;  %v14_v5 = vunpack.c.1.s8 %v12_v3  ;;  %v15_v6 = vunpack.c.2.s8 %v12_v3  ;;  %vm39_vm0 = vcmask 261120   ;;  %s124_s0 = smov [#allocation2]   ;;  %s73_s17 = sshll.u32 %s158_s2, 4  ;;  %s74_s17 = int_to_ptr.hbm [resolvable:$true] %s73_s17 }
   0x4   :  { %31 = vperm.xlu0 %96, %v28_v0   ;;  %s71_s1 = sshll.u32 %s124_s0, 4  ;;  %s125_s18 = smov 384   ;;  %s72_s1 = int_to_ptr.vmem [resolvable:$true] %s71_s1 }
   0x5   :  { %v16_v7 = vand.u32 255, %v13_v4  ;;  %v17_v8 = vand.u32 255, %v14_v5  ;;  %v18_v9 = vand.u32 255, %v15_v6  ;;  %s126_s19 = smov 24  }
   0x7   :  { %v19_v10 = vand.u32 15, %v16_v7  ;;  %v20_v11 = vand.u32 15, %v17_v8  ;;  %v21_v12 = vand.u32 15, %v18_v9  ;;  %v41_v13 = vshra.s32 %v16_v7, 4 }
   0x8   :  { %v42_v14 = vshra.s32 %v17_v8, 4  ;;  %v43_v18 = vshra.s32 %v18_v9, 4 }
   0x9   :  { %v22_v15 = vcvt.s32.f32 %v19_v10  ;;  %v23_v16 = vcvt.s32.f32 %v20_v11  ;;  %v24_v17 = vcvt.s32.f32 %v21_v12  ;;  %v44_v19 = vand.u32 15, %v41_v13 }
   0xa   :  { %v45_v20 = vand.u32 15, %v42_v14  ;;  %v46_v24 = vand.u32 15, %v43_v18 }
   0xb   :  { %v85_v21 = vadd.f32 -8.0, %v22_v15  ;;  %v86_v22 = vadd.f32 -8.0, %v23_v16  ;;  %v87_v23 = vadd.f32 -8.0, %v24_v17  ;;  %v47_v26 = vcvt.s32.f32 %v44_v19 }
   0xc   :  { %57 = vperm.xlu0 %96, %v91_v2   ;;  %v48_v27 = vcvt.s32.f32 %v45_v20  ;;  %v49_v31 = vcvt.s32.f32 %v46_v24 }
   0xd   :  { %v88_v32 = vadd.f32 -8.0, %v47_v26 }
   0xe   :  { %v89_v33 = vadd.f32 -8.0, %v48_v27  ;;  %v90_v34 = vadd.f32 -8.0, %v49_v31 }
  0x76   :  { %v32_v25 = vpop.permute.xlu0 %31 }
  0x77   :  { %v34_v28 = vmul.f32 %v85_v21, %v32_v25  ;;  %v35_v29 = vmul.f32 %v86_v22, %v32_v25  ;;  %v36_v30 = vmul.f32 %v87_v23, %v32_v25 }
  0x79   :  { %37 = vst [vmem:[#allocation2] sm:$0xff] %v34_v28 }
  0x7a   :  { %38 = vst [vmem:[#allocation2 + $0x8] sm:$0xff] %v35_v29 }
  0x7b   :  { %40 = vst.msk [vmem:[#allocation2 + $0x10] sm:$0xff] %vm39_vm0, %v36_v30 }
  0x7e   :  { %v58_v35 = vpop.permute.xlu0 %57 }
  0x7f   :  { %v60_v36 = vmul.f32 %v88_v32, %v58_v35  ;;  %v61_v37 = vmul.f32 %v89_v33, %v58_v35  ;;  %v62_v38 = vmul.f32 %v90_v34, %v58_v35 }
  0x81   :  { %64 = vst [vmem:[#allocation2 + $0x18] sm:$0xff] %v60_v36 }
  0x82   :  { %65 = vst [vmem:[#allocation2 + $0x20] sm:$0xff] %v61_v37 }
  0x83   :  { %66 = vst.msk [vmem:[#allocation2 + $0x28] sm:$0xff] %vm39_vm0, %v62_v38 }
  0x84   :  { %79 = dma.vmem_to_hbm [thread:$0]  %s72_s1, 768, %s74_s17, [#allocation3], %s125_s18, %s125_s18, %s126_s19  }
  0x85   :  { %121 = dma.done.wait [#allocation3], 768  }
  0x86   :  { %122 = vsyncadd [#allocation3], 4294966528 }
  0x87   :  { %84 = vsyncpa [#allocation3], 1 }

</bundles_post_ra>
